<compile_context>
chip_gen: v7x
topology: tpu7x:2x2x1
jax: 0.10.0
libtpu: 0.0.40
codegen_flags: <defaults>
</compile_context>

<pallas_src>
import functools
import math

import jax
import jax.numpy as jnp
import numpy as np
from jax.experimental import pallas as pl
from jax.experimental.pallas import tpu as pltpu

LANE = 128        # vreg lane width
SUBLANE = 8       # vreg sublane count (fp32)
MAX_TM = 256      # batch-tile cap; 256 matches v6e/v7x 2x256x256 MXU (128 is fine on v5e)


def _round_up(n, m):
    return ((n + m - 1) // m) * m


# ----------------------------------------------------------------------------
# Fused MLP kernel: x -> (linear -> tanh) * (L-1) -> linear, one batch tile
# ----------------------------------------------------------------------------
def make_fc_kernel(num_linear, d0, d0_pad):
    """Kernel for `num_linear` linear layers; tanh between all but the last.

    refs = (x_ref, w0, b0, ..., w_{L-1}, b_{L-1}, o_ref, xpad_scratch)
    """

    def kernel(*refs):
        x_ref = refs[0]
        o_ref = refs[1 + 2 * num_linear]
        xpad_ref = refs[2 + 2 * num_linear]

        if d0 == d0_pad:
            a = x_ref[...]                              # already lane-aligned
        else:
            # Zero-extend the (TM, d0) input tile to (TM, d0_pad) in VMEM so the
            # first matmul is a full-width MXU op (padding stays inside the kernel).
            xpad_ref[...] = jnp.zeros_like(xpad_ref)
            xpad_ref[:, :d0] = x_ref[...]
            a = xpad_ref[...]

        for i in range(num_linear):
            w = refs[1 + 2 * i][...]                    # (Din_p, Dout_p), fp32 or bf16
            b = refs[2 + 2 * i][...]                    # (1, Dout_p), fp32
            z = jnp.dot(a.astype(w.dtype), w, preferred_element_type=jnp.float32)
            z = z + b.astype(jnp.float32)               # bias-add in fp32
            a = jnp.tanh(z) if i < num_linear - 1 else z  # tanh in fp32 (EUP)
        o_ref[...] = a.astype(o_ref.dtype)

    return kernel


# ----------------------------------------------------------------------------
# Wrapper: batch-tiled grid, weights resident, lane-dense padded output
# ----------------------------------------------------------------------------
@functools.partial(jax.jit, static_argnames=("out_dim",))
def fc_forward(x, params_padded, out_dim):
    """x: (B, D0) natural shape.  params_padded: [(w_t (Din_p, Dout_p), b (1, Dout_p)), ...]."""
    B, D0 = x.shape
    D0p = params_padded[0][0].shape[0]
    DLp = params_padded[-1][0].shape[1]
    num_linear = len(params_padded)

    TM = min(_round_up(B, SUBLANE), MAX_TM)
    grid_n = pl.cdiv(B, TM)
    rows = grid_n * TM

    flat = []
    in_specs = [pl.BlockSpec((TM, D0), lambda i: (i, 0))]          # streamed x tiles
    for (w_t, b) in params_padded:
        flat.extend((w_t, b))
        in_specs.append(pl.BlockSpec(w_t.shape, lambda i: (0, 0)))  # resident weight
        in_specs.append(pl.BlockSpec(b.shape, lambda i: (0, 0)))    # resident bias
    out_specs = pl.BlockSpec((TM, DLp), lambda i: (i, 0))           # lane-dense output

    feat = [D0p] + [w.shape[1] for (w, _) in params_padded]
    flops = 2 * rows * sum(feat[i] * feat[i + 1] for i in range(num_linear))
    transcendentals = rows * sum(feat[1:-1])
    bytes_accessed = (
        B * D0 * x.dtype.itemsize
        + sum(int(w.size) * w.dtype.itemsize + int(b.size) * b.dtype.itemsize
              for (w, b) in params_padded)
        + B * DLp * 4
    )

    kernel = make_fc_kernel(num_linear, D0, D0p)
    out_pad = pl.pallas_call(
        kernel,
        out_shape=jax.ShapeDtypeStruct((B, DLp), jnp.float32),
        grid=(grid_n,),
        in_specs=in_specs,
        out_specs=out_specs,
        scratch_shapes=[pltpu.VMEM((TM, D0p), jnp.float32)],
        compiler_params=pltpu.CompilerParams(dimension_semantics=("parallel",)),
        cost_estimate=pl.CostEstimate(
            flops=int(flops),
            transcendentals=int(transcendentals),
            bytes_accessed=int(bytes_accessed),
        ),
    )(x.astype(jnp.float32), *flat)

    return out_pad[:, :out_dim]


# ----------------------------------------------------------------------------
# Parameter init (matches the PyTorch module: xavier_normal_ weights, zero bias)
# ----------------------------------------------------------------------------
def init_params(key, layers):
    """Unpadded params in PyTorch layout: [(w (fan_out, fan_in), b (fan_out,)), ...]."""
    params = []
    keys = jax.random.split(key, len(layers) - 1)
    for i in range(len(layers) - 1):
        fan_in, fan_out = layers[i], layers[i + 1]
        std = math.sqrt(2.0 / (fan_in + fan_out))  # xavier normal, gain=1.0
        w = std * jax.random.normal(keys[i], (fan_out, fan_in), jnp.float32)
        b = jnp.zeros((fan_out,), jnp.float32)
        params.append((w, b))
    return params


def pad_params(params, dtype=jnp.float32):
    """Transpose to (fan_in, fan_out), zero-pad feature dims to multiples of 128.

    dtype=jnp.bfloat16 stores MXU operands in bf16 (recommended on v6e/v7x at
    scale); biases stay fp32 so bias-add/tanh remain fp32 on all generations.
    """
    padded = []
    for (w, b) in params:
        fan_out, fan_in = w.shape
        fi_p = _round_up(fan_in, LANE)
        fo_p = _round_up(fan_out, LANE)
        w_t = jnp.zeros((fi_p, fo_p), jnp.float32).at[:fan_in, :fan_out].set(w.T)
        b_p = jnp.zeros((1, fo_p), jnp.float32).at[0, :fan_out].set(b)
        padded.append((w_t.astype(dtype), b_p))
    return padded


# ----------------------------------------------------------------------------
# Pure-JAX reference (mirrors FCModel.forward)
# ----------------------------------------------------------------------------
def reference_forward(x, params):
    a = x.astype(jnp.float32)
    for i, (w, b) in enumerate(params):
        z = a @ w.T + b
        a = jnp.tanh(z) if i < len(params) - 1 else z
    return a


# TODO(synk): FCModel.loss (MSELoss) is training-only and not part of forward();
# it is not implemented as a kernel.

if __name__ == "__main__":
    # Small shapes consistent with the module's forward: x is (batch, layers[0]).
    layers = [4, 32, 32, 3]   # input_dim=4, two hidden layers of 32, output=3
    B = 8

    root = jax.random.PRNGKey(0)
    k_param, k_x = jax.random.split(root)

    params = init_params(k_param, layers)
    params_padded = pad_params(params)              # fp32 (bit-parity); bf16 optional at scale
    x = jax.random.normal(k_x, (B, layers[0]), jnp.float32)

    out = fc_forward(x, params_padded, out_dim=layers[-1])
    out = jax.block_until_ready(out)

    ref = reference_forward(x, params)
    np.testing.assert_allclose(np.asarray(out), np.asarray(ref),
                               rtol=1e-5, atol=1e-5)
    assert out.shape == (B, layers[-1])
    print("KERNEL_OK")
</pallas_src>

<mosaic_0001>
module attributes {stable_mosaic.version = 11 : i64} {
  func.func @kernel(%arg0: i32, %arg1: memref<8x4xf32, #tpu.memory_space<vmem>>, %arg2: memref<128x128xf32, #tpu.memory_space<vmem>>, %arg3: memref<1x128xf32, #tpu.memory_space<vmem>>, %arg4: memref<128x128xf32, #tpu.memory_space<vmem>>, %arg5: memref<1x128xf32, #tpu.memory_space<vmem>>, %arg6: memref<128x128xf32, #tpu.memory_space<vmem>>, %arg7: memref<1x128xf32, #tpu.memory_space<vmem>>, %arg8: memref<8x128xf32, #tpu.memory_space<vmem>>, %arg9: memref<8x128xf32, #tpu.memory_space<vmem>>) attributes {dimension_semantics = [#tpu.dimension_semantics<parallel>], iteration_bounds = array<i64: 1>, scalar_prefetch = 0 : i64, scratch_operands = 1 : i64, tpu.core_type = #tpu.core_type<tc>, window_params = [{transform_indices = @transform_0, window_bounds = array<i64: 8, 4>}, {pipeline_mode = #tpu.pipeline_mode<synchronous>, transform_indices = @transform_1, window_bounds = array<i64: 128, 128>}, {pipeline_mode = #tpu.pipeline_mode<synchronous>, transform_indices = @transform_2, window_bounds = array<i64: 1, 128>}, {pipeline_mode = #tpu.pipeline_mode<synchronous>, transform_indices = @transform_3, window_bounds = array<i64: 128, 128>}, {pipeline_mode = #tpu.pipeline_mode<synchronous>, transform_indices = @transform_4, window_bounds = array<i64: 1, 128>}, {pipeline_mode = #tpu.pipeline_mode<synchronous>, transform_indices = @transform_5, window_bounds = array<i64: 128, 128>}, {pipeline_mode = #tpu.pipeline_mode<synchronous>, transform_indices = @transform_6, window_bounds = array<i64: 1, 128>}, {transform_indices = @transform_7, window_bounds = array<i64: 8, 128>}]} {
    %cst = arith.constant 0.000000e+00 : f32
    %0 = vector.broadcast %cst : f32 to vector<8x128xf32>
    %c0 = arith.constant 0 : index
    %c0_0 = arith.constant 0 : index
    %1 = vector.load %arg9[%c0, %c0_0] : memref<8x128xf32, #tpu.memory_space<vmem>>, vector<8x128xf32>
    tpu.vector_store %arg9[%c0, %c0_0], %0 {strides = array<i32>} : memref<8x128xf32, #tpu.memory_space<vmem>>, vector<8x128xf32>,
    %c0_1 = arith.constant 0 : index
    %c0_2 = arith.constant 0 : index
    %2 = vector.load %arg1[%c0_1, %c0_2] : memref<8x4xf32, #tpu.memory_space<vmem>>, vector<8x4xf32>
    %c0_3 = arith.constant 0 : index
    %c0_4 = arith.constant 0 : index
    %3 = vector.load %arg9[%c0_3, %c0_4] : memref<8x128xf32, #tpu.memory_space<vmem>>, vector<8x4xf32>
    tpu.vector_store %arg9[%c0_3, %c0_4], %2 {strides = array<i32>} : memref<8x128xf32, #tpu.memory_space<vmem>>, vector<8x4xf32>,
    %c0_5 = arith.constant 0 : index
    %c0_6 = arith.constant 0 : index
    %4 = vector.load %arg9[%c0_5, %c0_6] : memref<8x128xf32, #tpu.memory_space<vmem>>, vector<8x128xf32>
    %c0_7 = arith.constant 0 : index
    %c0_8 = arith.constant 0 : index
    %5 = vector.load %arg2[%c0_7, %c0_8] : memref<128x128xf32, #tpu.memory_space<vmem>>, vector<128x128xf32>
    %c0_9 = arith.constant 0 : index
    %c0_10 = arith.constant 0 : index
    %6 = vector.load %arg3[%c0_9, %c0_10] : memref<1x128xf32, #tpu.memory_space<vmem>>, vector<1x128xf32>
    %cst_11 = arith.constant dense<0.000000e+00> : vector<8x128xf32>
    %7 = tpu.matmul %4, %5, %cst_11 {dimension_numbers = #tpu.dot_dimension_numbers<[1], [0], [0], [1], [0, 0, 1, 1], [], []>} : vector<8x128xf32>, vector<128x128xf32>, vector<8x128xf32> -> vector<8x128xf32>
    %8 = vector.broadcast %6 : vector<1x128xf32> to vector<8x128xf32>
    %9 = arith.addf %7, %8 : vector<8x128xf32>
    %10 = math.tanh %9 : vector<8x128xf32>
    %c0_12 = arith.constant 0 : index
    %c0_13 = arith.constant 0 : index
    %11 = vector.load %arg4[%c0_12, %c0_13] : memref<128x128xf32, #tpu.memory_space<vmem>>, vector<128x128xf32>
    %c0_14 = arith.constant 0 : index
    %c0_15 = arith.constant 0 : index
    %12 = vector.load %arg5[%c0_14, %c0_15] : memref<1x128xf32, #tpu.memory_space<vmem>>, vector<1x128xf32>
    %cst_16 = arith.constant dense<0.000000e+00> : vector<8x128xf32>
    %13 = tpu.matmul %10, %11, %cst_16 {dimension_numbers = #tpu.dot_dimension_numbers<[1], [0], [0], [1], [0, 0, 1, 1], [], []>} : vector<8x128xf32>, vector<128x128xf32>, vector<8x128xf32> -> vector<8x128xf32>
    %14 = vector.broadcast %12 : vector<1x128xf32> to vector<8x128xf32>
    %15 = arith.addf %13, %14 : vector<8x128xf32>
    %16 = math.tanh %15 : vector<8x128xf32>
    %c0_17 = arith.constant 0 : index
    %c0_18 = arith.constant 0 : index
    %17 = vector.load %arg6[%c0_17, %c0_18] : memref<128x128xf32, #tpu.memory_space<vmem>>, vector<128x128xf32>
    %c0_19 = arith.constant 0 : index
    %c0_20 = arith.constant 0 : index
    %18 = vector.load %arg7[%c0_19, %c0_20] : memref<1x128xf32, #tpu.memory_space<vmem>>, vector<1x128xf32>
    %cst_21 = arith.constant dense<0.000000e+00> : vector<8x128xf32>
    %19 = tpu.matmul %16, %17, %cst_21 {dimension_numbers = #tpu.dot_dimension_numbers<[1], [0], [0], [1], [0, 0, 1, 1], [], []>} : vector<8x128xf32>, vector<128x128xf32>, vector<8x128xf32> -> vector<8x128xf32>
    %20 = vector.broadcast %18 : vector<1x128xf32> to vector<8x128xf32>
    %21 = arith.addf %19, %20 : vector<8x128xf32>
    %c0_22 = arith.constant 0 : index
    %c0_23 = arith.constant 0 : index
    %22 = vector.load %arg8[%c0_22, %c0_23] : memref<8x128xf32, #tpu.memory_space<vmem>>, vector<8x128xf32>
    tpu.vector_store %arg8[%c0_22, %c0_23], %21 {strides = array<i32>} : memref<8x128xf32, #tpu.memory_space<vmem>>, vector<8x128xf32>,
    return
  }
  func.func @transform_0(%arg0: i32) -> (i32, i32) {
    %c0_i32 = arith.constant 0 : i32
    %c0_i32_0 = arith.constant 0 : i32
    return %arg0, %c0_i32 : i32, i32
  }
  func.func @transform_1(%arg0: i32) -> (i32, i32) {
    %c0_i32 = arith.constant 0 : i32
    %c0_i32_0 = arith.constant 0 : i32
    %c0_i32_1 = arith.constant 0 : i32
    return %c0_i32, %c0_i32_0 : i32, i32
  }
  func.func @transform_2(%arg0: i32) -> (i32, i32) {
    %c0_i32 = arith.constant 0 : i32
    %c0_i32_0 = arith.constant 0 : i32
    %c0_i32_1 = arith.constant 0 : i32
    return %c0_i32, %c0_i32_0 : i32, i32
  }
  func.func @transform_3(%arg0: i32) -> (i32, i32) {
    %c0_i32 = arith.constant 0 : i32
    %c0_i32_0 = arith.constant 0 : i32
    %c0_i32_1 = arith.constant 0 : i32
    return %c0_i32, %c0_i32_0 : i32, i32
  }
  func.func @transform_4(%arg0: i32) -> (i32, i32) {
    %c0_i32 = arith.constant 0 : i32
    %c0_i32_0 = arith.constant 0 : i32
    %c0_i32_1 = arith.constant 0 : i32
    return %c0_i32, %c0_i32_0 : i32, i32
  }
  func.func @transform_5(%arg0: i32) -> (i32, i32) {
    %c0_i32 = arith.constant 0 : i32
    %c0_i32_0 = arith.constant 0 : i32
    %c0_i32_1 = arith.constant 0 : i32
    return %c0_i32, %c0_i32_0 : i32, i32
  }
  func.func @transform_6(%arg0: i32) -> (i32, i32) {
    %c0_i32 = arith.constant 0 : i32
    %c0_i32_0 = arith.constant 0 : i32
    %c0_i32_1 = arith.constant 0 : i32
    return %c0_i32, %c0_i32_0 : i32, i32
  }
  func.func @transform_7(%arg0: i32) -> (i32, i32) {
    %c0_i32 = arith.constant 0 : i32
    %c0_i32_0 = arith.constant 0 : i32
    return %arg0, %c0_i32 : i32, i32
  }
}

</mosaic_0001>

<bundles_post_ra>
// kernel: fc_forward.1
= control target key start
LH: loop header
LB: loop body
LE: loop exit
PB: predicated region body
PF: predicated region fallthrough
CT: control target
= control target key end

     0   :  { %12 = vsyncpa [#allocation4], 0  ;;  %s819_s0 = inlined_call_operand.vmem [shape: f32[8,4], index: 0, kind: input, shape index: {}]   ;;  %s820_s1 = inlined_call_operand.hbm [shape: f32[128,128], index: 1, kind: input, shape index: {}]   ;;  %s821_s2 = inlined_call_operand.vmem [shape: f32[1,128], index: 2, kind: input, shape index: {}]   ;;  %s822_s3 = inlined_call_operand.hbm [shape: f32[128,128], index: 3, kind: input, shape index: {}]   ;;  %s823_s4 = inlined_call_operand.vmem [shape: f32[1,128], index: 4, kind: input, shape index: {}]   ;;  %s824_s5 = inlined_call_operand.hbm [shape: f32[128,128], index: 5, kind: input, shape index: {}]   ;;  %s825_s6 = inlined_call_operand.vmem [shape: f32[1,128], index: 6, kind: input, shape index: {}]   ;;  %s826_s7 = inlined_call_operand.vmem [shape: f32[8,128], index: 7, kind: output, shape index: {}]  }
   0x1   :  { %13 = vsyncpa [#allocation6], 0  ;;  %s673_s24 = smov [#allocation5]   ;;  %s674_s26 = smov [#allocation3]  }
   0x2   :  { %s35_s25 = sshll.u32 %s673_s24, 4  ;;  %s21_s27 = sshll.u32 %s674_s26, 4  ;;  %s36_s25 = int_to_ptr.vmem [resolvable:$true] %s35_s25  ;;  %s721_s27 = int_to_ptr.vmem [resolvable:$true] %s21_s27 }
   0x3   :  { %s603_s30 = scalar_lea.hbm %s822_s3, 2048 }
   0x4   :  { %p604_p0 = scmp.ne.s32.totalorder %s822_s3, %s603_s30  ;;  %p607_p1 = scmp.lt.u32.totalorder %s603_s30, %s822_s3 }
   0x6   :  { %p609_p2 = pnand %p607_p1, %p604_p0 }
   0x8   :  { %612 = shalt.err (!%p609_p2)
}
   0x9   :  { %s613_s12 = scalar_lea.vmem %s36_s25, 2048  ;;  %p618_p4 = scmp.lt.s32.totalorder %s36_s25, %s36_s25 }
   0xa   :  { %p614_p3 = scmp.ne.s32.totalorder %s36_s25, %s613_s12  ;;  %p619_p5 = scmp.lt.s32.totalorder %s613_s12, %s613_s12 }
   0xc   :  { %p620_p6 = por %p619_p5, %p618_p4 }
   0xe   :  { %p621_p7 = pnand %p620_p6, %p614_p3 }
  0x10   :  { %624 = shalt.err (!%p621_p7)
}
  0x11   :  { %s675_s13 = smov 128   ;;  %s676_s14 = smov 8  }
  0x12   :  { %41 = dma.hbm_to_vmem [thread:$0]  %s822_s3, 2048, %s36_s25, [#allocation6], %s675_s13, %s675_s13, %s676_s14  }
  0x13   :  { %s625_s19 = scalar_lea.hbm %s820_s1, 2048 }
  0x14   :  { %p626_p8 = scmp.ne.s32.totalorder %s820_s1, %s625_s19  ;;  %p629_p9 = scmp.lt.u32.totalorder %s625_s19, %s820_s1 }
  0x16   :  { %p631_p10 = pnand %p629_p9, %p626_p8 }
  0x18   :  { %634 = shalt.err (!%p631_p10)
}
  0x19   :  { %s635_s24 = scalar_lea.vmem %s721_s27, 2048  ;;  %p640_p12 = scmp.lt.s32.totalorder %s721_s27, %s721_s27 }
  0x1a   :  { %p636_p11 = scmp.ne.s32.totalorder %s721_s27, %s635_s24  ;;  %p641_p13 = scmp.lt.s32.totalorder %s635_s24, %s635_s24 }
  0x1c   :  { %p642_p0 = por %p641_p13, %p640_p12 }
  0x1e   :  { %p643_p1 = pnand %p642_p0, %p636_p11 }
  0x20   :  { %646 = shalt.err (!%p643_p1)
}
  0x21   :  { %27 = dma.hbm_to_vmem [thread:$0]  %s820_s1, 2048, %s721_s27, [#allocation4], %s675_s13, %s675_s13, %s676_s14  }
  0x22   :  { %s677_s26 = smov [#allocation7]   ;;  %s647_s8 = scalar_lea.hbm %s824_s5, 2048 }
  0x23   :  { %s49_s28 = sshll.u32 %s677_s26, 4  ;;  %p648_p2 = scmp.ne.s32.totalorder %s824_s5, %s647_s8  ;;  %s50_s28 = int_to_ptr.vmem [resolvable:$true] %s49_s28 }
  0x24   :  { %p651_p3 = scmp.lt.u32.totalorder %s647_s8, %s824_s5 }
  0x26   :  { %p653_p4 = pnand %p651_p3, %p648_p2 }
  0x28   :  { %656 = shalt.err (!%p653_p4)
}
  0x29   :  { %s657_s15 = scalar_lea.vmem %s50_s28, 2048  ;;  %p662_p6 = scmp.lt.s32.totalorder %s50_s28, %s50_s28 }
  0x2a   :  { %p658_p5 = scmp.ne.s32.totalorder %s50_s28, %s657_s15  ;;  %p663_p7 = scmp.lt.s32.totalorder %s657_s15, %s657_s15 }
  0x2c   :  { %p664_p8 = por %p663_p7, %p662_p6 }
  0x2e   :  { %p665_p9 = pnand %p664_p8, %p658_p5 }
  0x30   :  { %668 = shalt.err (!%p665_p9)
}
  0x31   :  { %55 = dma.hbm_to_vmem [thread:$0]  %s824_s5, 2048, %s50_s28, [#allocation6], %s675_s13, %s675_s13, %s676_s14  }
  0x32   :  { %669 = dma.done.wait [#allocation4], 2048  }
  0x33   :  { %670 = vsyncadd [#allocation4], 4294965248 }
  0x34   :  { %671 = dma.done.wait [#allocation6], 4096  }
  0x35   :  { %672 = vsyncadd [#allocation6], 4294963200  ;;  %v678_v0 = vmov 0.0|0.0   ;;  %v679_v1 = vmov 0.0   ;;  %vm680_vm0 = vmmov 0   ;;  %v72_v2 = vld [vmem:[#allocation3] sm:$0xff] }
  0x36   :  { %519 = vmatprep.subr.bf16.mxu0 %v678_v0  ;;  %67 = vst [vmem:[#allocation2] sm:$0xff] %v679_v1  ;;  %446 = vmatprep.mubr.msk.f32.mxu0 %vm680_vm0, %v679_v1  ;;  %v73_v3 = vld [vmem:[#allocation3 + $0x8] sm:$0xff]  ;;  %v74_v4 = vld [vmem:[#allocation3 + $0x10] sm:$0xff]  ;;  %v75_v6 = vld [vmem:[#allocation3 + $0x18] sm:$0xff]  ;;  %vm69_vm1 = vcmask 31744  }
  0x37   :  { %543 = vmatprep.subr.bf16.mxu1 %v678_v0  ;;  %481 = vmatprep.mubr.msk.f32.mxu1 %vm680_vm0, %v679_v1  ;;  %v520_v5 = vpack.c.bf16 %v73_v3, %v72_v2  ;;  %v523_v7 = vpack.c.bf16 %v75_v6, %v74_v4  ;;  %v76_v8 = vld [vmem:[#allocation3 + $0x20] sm:$0xff]  ;;  %v77_v9 = vld [vmem:[#allocation3 + $0x28] sm:$0xff]  ;;  %v68_v10 = vld [vmem:[%s819_s0] sm:$0xff] }
  0x38   :  { %v166_v11 = vld [vmem:[#allocation5] sm:$0xff]  ;;  %70 = vst.msk [vmem:[#allocation2] sm:$0xff] %vm69_vm1, %v68_v10  ;;  %v167_v12 = vld [vmem:[#allocation5 + $0x8] sm:$0xff]  ;;  %v168_v13 = vld [vmem:[#allocation5 + $0x10] sm:$0xff]  ;;  %v526_v15 = vpack.c.bf16 %v77_v9, %v76_v8 }
  0x39   :  { %521 = vmatpush3.bf16.msra.mxu0 %v520_v5  ;;  %v169_v14 = vld [vmem:[#allocation5 + $0x18] sm:$0xff]  ;;  %v544_v16 = vpack.c.bf16 %v167_v12, %v166_v11  ;;  %v78_v17 = vld [vmem:[#allocation3 + $0x30] sm:$0xff]  ;;  %v170_v20 = vld [vmem:[#allocation5 + $0x20] sm:$0xff] }
  0x3a   :  { %522 = vmatprep.subr.bf16.mxu0 %v678_v0  ;;  %v79_v18 = vld [vmem:[#allocation3 + $0x38] sm:$0xff]  ;;  %v547_v19 = vpack.c.bf16 %v169_v14, %v168_v13  ;;  %v171_v21 = vld [vmem:[#allocation5 + $0x28] sm:$0xff]  ;;  %v80_v23 = vld [vmem:[#allocation3 + $0x40] sm:$0xff] }
  0x3b   :  { %545 = vmatpush3.bf16.msra.mxu1 %v544_v16  ;;  %v529_v22 = vpack.c.bf16 %v79_v18, %v78_v17  ;;  %v81_v24 = vld [vmem:[#allocation3 + $0x48] sm:$0xff]  ;;  %v550_v25 = vpack.c.bf16 %v171_v21, %v170_v20  ;;  %v172_v26 = vld [vmem:[#allocation5 + $0x30] sm:$0xff]  ;;  %v173_v27 = vld [vmem:[#allocation5 + $0x38] sm:$0xff] }
  0x3c   :  { %546 = vmatprep.subr.bf16.mxu1 %v678_v0  ;;  %v532_v28 = vpack.c.bf16 %v81_v24, %v80_v23  ;;  %v82_v29 = vld [vmem:[#allocation3 + $0x50] sm:$0xff]  ;;  %v83_v30 = vld [vmem:[#allocation3 + $0x58] sm:$0xff]  ;;  %v553_v31 = vpack.c.bf16 %v173_v27, %v172_v26  ;;  %v174_v32 = vld [vmem:[#allocation5 + $0x40] sm:$0xff] }
  0x3d   :  { %524 = vmatpush3.bf16.msra.mxu0 %v523_v7  ;;  %v175_v33 = vld [vmem:[#allocation5 + $0x48] sm:$0xff]  ;;  %v535_v34 = vpack.c.bf16 %v83_v30, %v82_v29  ;;  %v84_v35 = vld [vmem:[#allocation3 + $0x60] sm:$0xff]  ;;  %v86_v39 = vld [vmem:[#allocation3 + $0x70] sm:$0xff] }
  0x3e   :  { %525 = vmatprep.subr.bf16.mxu0 %v678_v0  ;;  %v85_v36 = vld [vmem:[#allocation3 + $0x68] sm:$0xff]  ;;  %v556_v37 = vpack.c.bf16 %v175_v33, %v174_v32  ;;  %v87_v40 = vld [vmem:[#allocation3 + $0x78] sm:$0xff]  ;;  %v176_v43 = vld [vmem:[#allocation5 + $0x50] sm:$0xff] }
  0x3f   :  { %548 = vmatpush3.bf16.msra.mxu1 %v547_v19  ;;  %v538_v38 = vpack.c.bf16 %v85_v36, %v84_v35  ;;  %v541_v41 = vpack.c.bf16 %v87_v40, %v86_v39  ;;  %v71_v42 = vld [vmem:[#allocation2] sm:$0xff]  ;;  %v178_v46 = vld [vmem:[#allocation5 + $0x60] sm:$0xff]  ;;  %v179_v47 = vld [vmem:[#allocation5 + $0x68] sm:$0xff] }
  0x40   :  { %549 = vmatprep.subr.bf16.mxu1 %v678_v0  ;;  %v177_v44 = vld [vmem:[#allocation5 + $0x58] sm:$0xff]  ;;  %v562_v48 = vpack.c.bf16 %v179_v47, %v178_v46  ;;  %v180_v49 = vld [vmem:[#allocation5 + $0x70] sm:$0xff]  ;;  %v260_v52 = vld [vmem:[#allocation7] sm:$0xff] }
  0x41   :  { %527 = vmatpush3.bf16.msra.mxu0 %v526_v15  ;;  %v559_v45 = vpack.c.bf16 %v177_v44, %v176_v43  ;;  %v181_v50 = vld [vmem:[#allocation5 + $0x78] sm:$0xff]  ;;  %v261_v53 = vld [vmem:[#allocation7 + $0x8] sm:$0xff]  ;;  %v262_v54 = vld [vmem:[#allocation7 + $0x10] sm:$0xff] }
  0x42   :  { %528 = vmatprep.subr.bf16.mxu0 %v678_v0  ;;  %v565_v51 = vpack.c.bf16 %v181_v50, %v180_v49  ;;  %v568_v55 = vpack.c.bf16 %v261_v53, %v260_v52  ;;  %v263_v56 = vld [vmem:[#allocation7 + $0x18] sm:$0xff]  ;;  %v264_v58 = vld [vmem:[#allocation7 + $0x20] sm:$0xff]  ;;  %v265_v59 = vld [vmem:[#allocation7 + $0x28] sm:$0xff] }
  0x43   :  { %551 = vmatpush3.bf16.msra.mxu1 %v550_v25  ;;  %v571_v57 = vpack.c.bf16 %v263_v56, %v262_v54  ;;  %v574_v60 = vpack.c.bf16 %v265_v59, %v264_v58  ;;  %v266_v61 = vld [vmem:[#allocation7 + $0x30] sm:$0xff]  ;;  %v267_v62 = vld [vmem:[#allocation7 + $0x38] sm:$0xff]  ;;  %v269_v2 = vld [vmem:[#allocation7 + $0x48] sm:$0xff] }
  0x44   :  { %552 = vmatprep.subr.bf16.mxu1 %v678_v0  ;;  %v577_v63 = vpack.c.bf16 %v267_v62, %v266_v61  ;;  %v360_v4 = vld [vmem:[%s821_s2] ss:$0 sm:$0xff]  ;;  %v270_v9 = vld [vmem:[#allocation7 + $0x50] sm:$0xff]  ;;  %v272_v12 = vld [vmem:[#allocation7 + $0x60] sm:$0xff] }
  0x45   :  { %530 = vmatpush3.bf16.msra.mxu0 %v529_v22  ;;  %v271_v10 = vld [vmem:[#allocation7 + $0x58] sm:$0xff]  ;;  %v273_v13 = vld [vmem:[#allocation7 + $0x68] sm:$0xff]  ;;  %v274_v15 = vld [vmem:[#allocation7 + $0x70] sm:$0xff] }
  0x46   :  { %531 = vmatprep.subr.bf16.mxu0 %v678_v0  ;;  %v583_v11 = vpack.c.bf16 %v271_v10, %v270_v9  ;;  %v586_v14 = vpack.c.bf16 %v273_v13, %v272_v12  ;;  %v275_v16 = vld [vmem:[#allocation7 + $0x78] sm:$0xff] }
  0x47   :  { %554 = vmatpush3.bf16.msra.mxu1 %v553_v31  ;;  %v589_v17 = vpack.c.bf16 %v275_v16, %v274_v15  ;;  %v361_v18 = vld [vmem:[%s823_s4] ss:$0 sm:$0xff] }
  0x48   :  { %555 = vmatprep.subr.bf16.mxu1 %v678_v0  ;;  %v362_v23 = vld [vmem:[%s825_s6] ss:$0 sm:$0xff] }
  0x49   :  { %533 = vmatpush3.bf16.msra.mxu0 %v532_v28 }
  0x4a   :  { %534 = vmatprep.subr.bf16.mxu0 %v678_v0 }
  0x4b   :  { %557 = vmatpush3.bf16.msra.mxu1 %v556_v37 }
  0x4c   :  { %558 = vmatprep.subr.bf16.mxu1 %v678_v0 }
  0x4d   :  { %536 = vmatpush3.bf16.msra.mxu0 %v535_v34 }
  0x4e   :  { %537 = vmatprep.subr.bf16.mxu0 %v678_v0 }
  0x4f   :  { %560 = vmatpush3.bf16.msra.mxu1 %v559_v45 }
  0x50   :  { %561 = vmatprep.subr.bf16.mxu1 %v678_v0 }
  0x51   :  { %539 = vmatpush3.bf16.msra.mxu0 %v538_v38 }
  0x52   :  { %540 = vmatprep.subr.bf16.mxu0 %v678_v0 }
  0x53   :  { %563 = vmatpush3.bf16.msra.mxu1 %v562_v48 }
  0x54   :  { %564 = vmatprep.subr.bf16.mxu1 %v678_v0 }
  0x55   :  { %542 = vmatpush3.bf16.msra.mxu0 %v541_v41 }
  0x56   :  { %567 = vmatprep.subr.bf16.mxu0 %v678_v0 }
  0x57   :  { %566 = vmatpush3.bf16.msra.mxu1 %v565_v51 }
  0x58   :  { %447 = vmatmul.mubr.f32.vlgmr.msra.gmra.mrb[0].mxu0 %v71_v42 }
  0x59   :  { %516 = vmatprep.mubr.msk.f32.mxu0 %vm680_vm0, %v679_v1  ;;  %569 = vmatpush3.bf16.msra.mxu0 %v568_v55  ;;  %v268_v1 = vld [vmem:[#allocation7 + $0x40] sm:$0xff] }
  0x5a   :  { %570 = vmatprep.subr.bf16.mxu0 %v678_v0  ;;  %v580_v3 = vpack.c.bf16 %v269_v2, %v268_v1 }
  0x5d   :  { %572 = vmatpush3.bf16.msra.mxu0 %v571_v57 }
  0x5e   :  { %573 = vmatprep.subr.bf16.mxu0 %v678_v0 }
  0x61   :  { %575 = vmatpush3.bf16.msra.mxu0 %v574_v60 }
  0x62   :  { %576 = vmatprep.subr.bf16.mxu0 %v678_v0 }
  0x65   :  { %578 = vmatpush3.bf16.msra.mxu0 %v577_v63 }
  0x66   :  { %579 = vmatprep.subr.bf16.mxu0 %v678_v0 }
  0x69   :  { %581 = vmatpush3.bf16.msra.mxu0 %v580_v3 }
  0x6a   :  { %582 = vmatprep.subr.bf16.mxu0 %v678_v0 }
  0x6d   :  { %584 = vmatpush3.bf16.msra.mxu0 %v583_v11 }
  0x6e   :  { %585 = vmatprep.subr.bf16.mxu0 %v678_v0 }
  0x71   :  { %587 = vmatpush3.bf16.msra.mxu0 %v586_v14 }
  0x72   :  { %588 = vmatprep.subr.bf16.mxu0 %v678_v0 }
  0x75   :  { %590 = vmatpush3.bf16.msra.mxu0 %v589_v17 }
 0x12b   :  { %v161_v5 = vpop.f32.mrb[0].mxu0 }
 0x12c   :  { %v162_v6 = vadd.f32 %v360_v4, %v161_v5  ;;  %v448_v7 = vpop.f32.mrb[1].mxu0 }
 0x12e   :  { %599 = vtanh.f32 %v162_v6 }
 0x138   :  { %v600_v8 = vpop.eup %599 }
 0x139   :  { %482 = vmatmul.mubr.f32.vlgmr.msra.gmra.mrb[0].mxu1 %v600_v8 }
 0x20c   :  { %v255_v19 = vpop.f32.mrb[0].mxu1 }
 0x20d   :  { %v256_v20 = vadd.f32 %v361_v18, %v255_v19  ;;  %v483_v21 = vpop.f32.mrb[1].mxu1 }
 0x20f   :  { %601 = vtanh.f32 %v256_v20 }
 0x219   :  { %v602_v22 = vpop.eup %601 }
 0x21a   :  { %517 = vmatmul.mubr.f32.vlgmr.msra.gmra.mrb[2].mxu0 %v602_v22 }
 0x2ed   :  { %v349_v24 = vpop.f32.mrb[2].mxu0 }
 0x2ee   :  { %v350_v25 = vadd.f32 %v362_v23, %v349_v24  ;;  %v518_v26 = vpop.f32.mrb[3].mxu0 }
 0x2f0   :  { %353 = vst [vmem:[%s826_s7] sm:$0xff] %v350_v25 }
 0x2f1   :  { %358 = vsyncpa [#allocation4], 1 }
 0x2f2   :  { %359 = vsyncpa [#allocation6], 1 }

</bundles_post_ra>
